<compile_context>
chip_gen: v7x
topology: tpu7x:2x2x1
jax: 0.10.0
libtpu: 0.0.40
codegen_flags: <defaults>
</compile_context>

<pallas_src>
import numpy as np
import jax
import jax.numpy as jnp
from jax.experimental import pallas as pl
from jax.experimental.pallas import tpu as pltpu


def _get_sinusoid_encoding_table(n_position: int, encoding_dim: int) -> jnp.ndarray:
    """Deterministic sinusoid table, identical math to the PyTorch module."""
    pos = np.arange(n_position, dtype=np.float64)[:, None]            # (P, 1)
    hid = np.arange(encoding_dim, dtype=np.float64)[None, :]          # (1, D)
    angle = pos / np.power(10000.0, 2.0 * (hid // 2) / encoding_dim)  # (P, D)
    table = np.empty_like(angle)
    table[:, 0::2] = np.sin(angle[:, 0::2])
    table[:, 1::2] = np.cos(angle[:, 1::2])
    return jnp.asarray(table, dtype=jnp.float32)                      # (P, D)


def _pos_enc_kernel(x_ref, pos_ref, o_ref):
    # x_ref/o_ref: (TB, TF) tile of the flattened (B, S*D) array
    # pos_ref:     (1, TF)  matching slice of the flattened positional table
    # Broadcast add on the VPU; no reshapes/broadcasts inside the kernel.
    o_ref[...] = x_ref[...] + pos_ref[...]


def _sublane_multiple(itemsize: int) -> int:
    # Sub-32-bit dtypes pack along sublanes: f32 -> 8, bf16 -> 16, int8/fp8 -> 32.
    return max(8, 32 // max(1, itemsize))


def _choose_tiles(B: int, F: int, itemsize: int, max_tile_bytes: int):
    """Pick (TB, TF): TB first (>= sublane multiple), then lane-dense TF."""
    sub = _sublane_multiple(itemsize)
    # Clamp per-tile cap so 2x(x)+2x(out)+pos always fits well under v7x's 64 MiB VMEM.
    max_tile_bytes = min(max_tile_bytes, 6 * 1024 * 1024)
    max_tile_elems = max(sub * 128, max_tile_bytes // itemsize)

    if B * F <= max_tile_elems:
        TB, TF = B, F                                   # whole array in one tile
    elif F <= max_tile_elems // sub:
        # Full feature extent fits with at least `sub` batch rows per tile.
        TF = F
        TB = min(B, max(sub, ((max_tile_elems // F) // sub) * sub))
    else:
        # Must tile along features; keep TB at the packing height (never 1),
        # then give the rest of the budget to a lane-dense (multiple-of-128) TF.
        TB = min(B, sub)
        TF = min(F, max(128, ((max_tile_elems // TB) // 128) * 128))

    # v7x has 2 TensorCores: for non-trivial problems make sure at least one
    # "parallel" axis has >= 2 programs so both cores get work (free on v5e/v6e).
    if B * F * itemsize > (2 << 20) and pl.cdiv(B, TB) * pl.cdiv(F, TF) == 1:
        if B >= 2 * sub:
            TB = max(sub, ((TB // 2) // sub) * sub)
        elif F >= 256:
            TF = max(128, ((TF // 2) // 128) * 128)

    return TB, TF, sub


def _vmem_limit_bytes(TB: int, TF: int, itemsize: int, pos_buffers: int) -> int:
    """Scoped-VMEM limit derived from the actual tile footprint (+headroom)."""
    xo_tile = TB * TF * itemsize
    pos_row = TF * itemsize
    need = 2 * xo_tile * 2 + pos_buffers * pos_row      # x + out double-buffered, pos row(s)
    limit = int(need * 1.25) + (1 << 20)                # 25% + 1 MiB headroom
    return int(min(max(limit, 4 << 20), 48 << 20))      # <= 48 MiB: safe on v7x (64 MiB)


class PositionalEncoding:
    """JAX/Pallas port of the PyTorch module: forward(x) = x + pos_table[:, :S]."""

    def __init__(self, encoding_dim: int, num: int = 10):
        self.encoding_dim = encoding_dim
        self.num = num
        self.pos_table = _get_sinusoid_encoding_table(num, encoding_dim)  # (num, D)
        self._flat_cache = {}  # (S, dtype name) -> (1, S*D) flattened, cast table

    def _flat_pos(self, S: int, dtype) -> jnp.ndarray:
        # Hoisted preprocessing: slice + flatten + cast done once per (S, dtype).
        key = (S, jnp.dtype(dtype).name)
        if key not in self._flat_cache:
            self._flat_cache[key] = jnp.asarray(
                self.pos_table[:S, :].reshape(1, S * self.encoding_dim), dtype=dtype)
        return self._flat_cache[key]

    def __call__(self, x: jnp.ndarray, *, max_tile_bytes: int = 4 * 1024 * 1024,
                 force_pallas: bool = False) -> jnp.ndarray:
        B, S, D = x.shape
        assert D == self.encoding_dim, f"input dim {D} != encoding_dim {self.encoding_dim}"
        assert S <= self.num, f"sequence length {S} exceeds positional table size {self.num}"

        itemsize = jnp.dtype(x.dtype).itemsize
        total_bytes = B * S * D * itemsize

        # Small-input fast path: pallas_call launch overhead dominates tiny shapes.
        if not force_pallas and total_bytes < (1 << 20):
            return x + self.pos_table[None, :S, :].astype(x.dtype)

        # Flatten to a lane-dense 2D layout: (B, F) with F = S*D.
        F = S * D
        x2 = x.reshape(B, F)
        pos2 = self._flat_pos(S, x.dtype)

        TB, TF, _ = _choose_tiles(B, F, itemsize, max_tile_bytes)
        nf = pl.cdiv(F, TF)
        nb = pl.cdiv(B, TB)

        # Single-buffer the pos row only when it is big enough to matter and is
        # actually reused across the inner (batch) axis; keeps the default path
        # for small rows.
        pos_row_bytes = TF * itemsize
        single_buffer_pos = (nb > 1) and pos_row_bytes >= (512 << 10)
        pos_buffers = 1 if single_buffer_pos else 2
        pos_spec_kwargs = dict(pipeline_mode=pl.Buffered(1)) if single_buffer_pos else {}

        vmem_limit = _vmem_limit_bytes(TB, TF, itemsize, pos_buffers)

        out2 = pl.pallas_call(
            _pos_enc_kernel,
            out_shape=jax.ShapeDtypeStruct((B, F), x.dtype),
            grid_spec=pltpu.PrefetchScalarGridSpec(
                num_scalar_prefetch=0,
                # Feature tiles outer, batch tiles inner: the pos block index is
                # constant over the inner axis, so it is not re-DMA'd per batch tile.
                grid=(nf, nb),
                in_specs=[
                    pl.BlockSpec((TB, TF), lambda fj, bi: (bi, fj)),                 # x tile
                    pl.BlockSpec((1, TF), lambda fj, bi: (0, fj), **pos_spec_kwargs),  # pos row
                ],
                out_specs=pl.BlockSpec((TB, TF), lambda fj, bi: (bi, fj)),
            ),
            compiler_params=pltpu.CompilerParams(
                dimension_semantics=("parallel", "parallel"),
                vmem_limit_bytes=vmem_limit,
            ),
        )(x2, pos2)

        return out2.reshape(B, S, D)


if __name__ == "__main__":
    # Shapes consistent with the module: num=10 positions, encoding_dim=32,
    # input x of shape (batch=2, seq=8, encoding_dim=32) with seq <= num.
    num, encoding_dim = 10, 32
    pe = PositionalEncoding(encoding_dim, num=num)

    key = jax.random.PRNGKey(0)

    # 1) Small canonical test (single tile) — force the Pallas path so the kernel runs.
    B, S = 2, 8
    x = jax.random.normal(key, (B, S, encoding_dim), dtype=jnp.float32)
    out = jax.block_until_ready(pe(x, force_pallas=True))
    ref = x + pe.pos_table[None, :S, :]
    assert out.shape == (B, S, encoding_dim)
    assert jnp.allclose(out, ref, atol=1e-6), "mismatch vs reference (single-tile path)"

    # 2) Multi-tile, ragged-edge test (B % TB != 0 and F % TF != 0) with a tiny tile
    #    budget to exercise the tiled/padded path the review asked to validate.
    B2, S2 = 11, 9
    x2 = jax.random.normal(jax.random.PRNGKey(1), (B2, S2, encoding_dim), dtype=jnp.float32)
    out2 = jax.block_until_ready(pe(x2, max_tile_bytes=4096, force_pallas=True))
    ref2 = x2 + pe.pos_table[None, :S2, :]
    assert out2.shape == (B2, S2, encoding_dim)
    assert jnp.allclose(out2, ref2, atol=1e-6), "mismatch vs reference (ragged multi-tile path)"

    print("KERNEL_OK")
</pallas_src>

<mosaic_0001>
module attributes {stable_mosaic.version = 11 : i64} {
  func.func @_pos_enc_kernel(%arg0: i32, %arg1: i32, %arg2: memref<2x256xf32, #tpu.memory_space<vmem>>, %arg3: memref<1x256xf32, #tpu.memory_space<vmem>>, %arg4: memref<2x256xf32, #tpu.memory_space<vmem>>) attributes {dimension_semantics = [#tpu.dimension_semantics<parallel>, #tpu.dimension_semantics<parallel>], iteration_bounds = array<i64: 1, 1>, scalar_prefetch = 0 : i64, scratch_operands = 0 : i64, tpu.core_type = #tpu.core_type<tc>, window_params = [{transform_indices = @transform_0, window_bounds = array<i64: 2, 256>}, {transform_indices = @transform_1, window_bounds = array<i64: 1, 256>}, {transform_indices = @transform_2, window_bounds = array<i64: 2, 256>}]} {
    %c0 = arith.constant 0 : index
    %c0_0 = arith.constant 0 : index
    %0 = vector.load %arg2[%c0, %c0_0] : memref<2x256xf32, #tpu.memory_space<vmem>>, vector<2x256xf32>
    %c0_1 = arith.constant 0 : index
    %c0_2 = arith.constant 0 : index
    %1 = vector.load %arg3[%c0_1, %c0_2] : memref<1x256xf32, #tpu.memory_space<vmem>>, vector<1x256xf32>
    %2 = vector.broadcast %1 : vector<1x256xf32> to vector<2x256xf32>
    %3 = arith.addf %0, %2 : vector<2x256xf32>
    %c0_3 = arith.constant 0 : index
    %c0_4 = arith.constant 0 : index
    %4 = vector.load %arg4[%c0_3, %c0_4] : memref<2x256xf32, #tpu.memory_space<vmem>>, vector<2x256xf32>
    tpu.vector_store %arg4[%c0_3, %c0_4], %3 {strides = array<i32>} : memref<2x256xf32, #tpu.memory_space<vmem>>, vector<2x256xf32>,
    return
  }
  func.func @transform_0(%arg0: i32, %arg1: i32) -> (i32, i32) {
    %c0_i32 = arith.constant 0 : i32
    return %arg1, %arg0 : i32, i32
  }
  func.func @transform_1(%arg0: i32, %arg1: i32) -> (i32, i32) {
    %c0_i32 = arith.constant 0 : i32
    %c0_i32_0 = arith.constant 0 : i32
    return %c0_i32, %arg0 : i32, i32
  }
  func.func @transform_2(%arg0: i32, %arg1: i32) -> (i32, i32) {
    %c0_i32 = arith.constant 0 : i32
    return %arg1, %arg0 : i32, i32
  }
}

</mosaic_0001>

<bundles_post_ra>
// kernel: tpu_custom_call.1
= control target key start
LH: loop header
LB: loop body
LE: loop exit
PB: predicated region body
PF: predicated region fallthrough
CT: control target
= control target key end

     0   :  { %7 = vsyncpa [#allocation3], 0  ;;  %s157_s0 = inlined_call_operand.hbm [shape: f32[2,256], index: 0, kind: input, shape index: {}]   ;;  %s158_s1 = inlined_call_operand.vmem [shape: f32[1,256], index: 1, kind: input, shape index: {}]   ;;  %s159_s2 = inlined_call_operand.hbm [shape: f32[2,256], index: 2, kind: output, shape index: {}]  }
   0x1   :  { %8 = vsyncpa [#allocation4], 0  ;;  %s112_s9 = smov [#allocation2]   ;;  %s64_s13 = scalar_lea.hbm %s157_s0, 64 }
   0x2   :  { %s15_s10 = sshll.u32 %s112_s9, 4  ;;  %p65_p0 = scmp.ne.s32.totalorder %s157_s0, %s64_s13  ;;  %s16_s10 = int_to_ptr.vmem [resolvable:$true] %s15_s10 }
   0x3   :  { %p68_p1 = scmp.lt.u32.totalorder %s64_s13, %s157_s0 }
   0x5   :  { %p70_p2 = pnand %p68_p1, %p65_p0 }
   0x7   :  { %73 = shalt.err (!%p70_p2)
}
   0x8   :  { %s74_s18 = scalar_lea.vmem %s16_s10, 64  ;;  %p79_p4 = scmp.lt.s32.totalorder %s16_s10, %s16_s10 }
   0x9   :  { %p75_p3 = scmp.ne.s32.totalorder %s16_s10, %s74_s18  ;;  %p80_p5 = scmp.lt.s32.totalorder %s74_s18, %s74_s18 }
   0xb   :  { %p81_p6 = por %p80_p5, %p79_p4 }
   0xd   :  { %p82_p7 = pnand %p81_p6, %p75_p3 }
   0xf   :  { %85 = shalt.err (!%p82_p7)
}
  0x10   :  { %18 = dma.hbm_to_vmem [thread:$0]  %s157_s0, 64, %s16_s10, [#allocation3]  }
  0x11   :  { %108 = dma.done.wait [#allocation3], 64  }
  0x12   :  { %109 = vsyncadd [#allocation3], 4294967232  ;;  %v27_v0 = vlaneseq  ;;  %v113_v1 = vmov 1983009808   ;;  %v25_v7 = vld [vmem:[%s158_s1] sm:$0x3] }
  0x13   :  { %v37_v2 = vunpack.c.l.s4 %v113_v1  ;;  %v24_v12 = vld [vmem:[#allocation2] sm:$0xf]  ;;  %s114_s23 = smov [#allocation5]  }
  0x14   :  { %v28_v3 = vshrl.u32 %v27_v0, 7  ;;  %s52_s0 = sshll.u32 %s114_s23, 4  ;;  %s53_s0 = int_to_ptr.vmem [resolvable:$true] %s52_s0 }
  0x15   :  { %v38_v6 = vunpack.c.0.s8 %v37_v2  ;;  %s86_s24 = scalar_lea.vmem %s53_s0, 64  ;;  %p91_p9 = scmp.lt.s32.totalorder %s53_s0, %s53_s0 }
  0x16   :  { %v29_v4 = vsub.s32 0, %v28_v3  ;;  %v33_v5 = vsub.s32 1, %v28_v3  ;;  %p87_p8 = scmp.ne.s32.totalorder %s53_s0, %s86_s24  ;;  %p92_p10 = scmp.lt.s32.totalorder %s86_s24, %s86_s24 }
  0x17   :  { %v41_v10 = vsub.s32 %v38_v6, %v28_v3 }
  0x18   :  { %v30_v8 = vrot.slane %v25_v7, %v29_v4  ;;  %v34_v9 = vrot.slane %v25_v7, %v33_v5  ;;  %p93_p11 = por %p92_p10, %p91_p9 }
  0x1a   :  { %v35_v11 = vcombine.low %v30_v8, %v34_v9  ;;  %p94_p12 = pnand %p93_p11, %p87_p8 }
  0x1c   :  { %v42_v13 = vrot.slane %v35_v11, %v41_v10 }
  0x1e   :  { %v44_v14 = vadd.f32 %v42_v13, %v24_v12 }
  0x20   :  { %45 = vst [vmem:[#allocation5] sm:$0xf] %v44_v14 }
  0x21   :  { %97 = shalt.err (!%p94_p12)
}
  0x22   :  { %s98_s26 = scalar_lea.hbm %s159_s2, 64 }
  0x23   :  { %p99_p13 = scmp.ne.s32.totalorder %s159_s2, %s98_s26  ;;  %p102_p0 = scmp.lt.u32.totalorder %s98_s26, %s159_s2 }
  0x25   :  { %p104_p1 = pnand %p102_p0, %p99_p13 }
  0x27   :  { %107 = shalt.err (!%p104_p1)
}
  0x28   :  { %55 = dma.vmem_to_hbm [thread:$0]  %s53_s0, 64, %s159_s2, [#allocation4]  }
  0x29   :  { %110 = dma.done.wait [#allocation4], 64  }
  0x2a   :  { %111 = vsyncadd [#allocation4], 4294967232 }
  0x2b   :  { %59 = vsyncpa [#allocation3], 1 }
  0x2c   :  { %60 = vsyncpa [#allocation4], 1 }

</bundles_post_ra>
